<compile_context>
chip_gen: v5e
topology: v5e:2x2
jax: 0.10.0
libtpu: 0.0.40
codegen_flags: <defaults>
</compile_context>

<pallas_src>
import functools

import jax
import jax.numpy as jnp
import numpy as np
from jax.experimental import pallas as pl
from jax.experimental.pallas import tpu as pltpu

_HIGHEST = jax.lax.Precision.HIGHEST


def _softmax_lastdim(e):
    """Numerically-stable softmax over the last (lane) axis, f32 math."""
    m = jnp.max(e, axis=-1, keepdims=True)
    p = jnp.exp(e - m)
    s = jnp.sum(p, axis=-1, keepdims=True)
    r = pl.reciprocal(s, approx=True)      # EUP vrcp (free slot)
    r = r * (2.0 - s * r)                  # one Newton step -> ~f32 accuracy
    return p * r


def _attn_kernel(method, *refs):
    if method == "dot":
        hidden_ref, enc_ref, out_ref = refs
        hidden = hidden_ref[...]                     # (B, H)
        enc = enc_ref[...]                           # (B, L, H)
        # e[b, l] = hidden[b, :] . enc[b, l, :]
        e = jnp.sum(enc * hidden[:, None, :], axis=2)                      # (B, L)

    elif method == "general":
        hidden_ref, enc_ref, w_ref, b_ref, out_ref = refs
        hidden = hidden_ref[...]                     # (B, H)
        enc = enc_ref[...]                           # (B, L, H)
        w = w_ref[...]                               # (H, H) torch layout (out, in)
        b = b_ref[...]                               # (1, H)
        # sum_o hidden[b,o] * (enc @ W^T + bias)[l,b,o]
        #   = enc[b,l,:] . (hidden[b,:] @ W)  +  hidden[b,:] . bias
        # -> project hidden ONCE instead of projecting the whole encoder output.
        q = jnp.dot(hidden, w, preferred_element_type=jnp.float32,
                    precision=_HIGHEST)                                    # (B, H)
        hb = jnp.sum(hidden * b, axis=1, keepdims=True)                    # (B, 1)
        e = jnp.sum(enc * q[:, None, :], axis=2) + hb                      # (B, L)

    else:  # concat
        hidden_ref, enc_ref, wht_ref, wet_ref, b_ref, v_ref, out_ref = refs
        hidden = hidden_ref[...]                     # (B, H)
        enc = enc_ref[...]                           # (B, L, H)
        wht = wht_ref[...]                           # (H, H) = W[:, :H].T  (pre-transposed on host)
        wet = wet_ref[...]                           # (H, H) = W[:, H:].T  (pre-transposed on host)
        b = b_ref[...]                               # (1, H)
        v = v_ref[...]                               # (1, H)
        B, L, H = enc.shape
        # hidden projection + bias computed once (B, H); encoder projection is a
        # batched MXU matmul (B, L, H) @ (H, H) -> (B, L, H).  No concat buffer.
        hp = jnp.dot(hidden, wht, preferred_element_type=jnp.float32,
                     precision=_HIGHEST) + b                               # (B, H)
        wet_b = jnp.broadcast_to(wet[None], (B, H, H))
        enc_proj = jnp.einsum("blh,bhk->blk", enc, wet_b,
                              preferred_element_type=jnp.float32,
                              precision=_HIGHEST)                          # (B, L, H)
        proj = jnp.tanh(enc_proj + hp[:, None, :])                         # (B, L, H)
        e = jnp.sum(proj * v[:, None, :], axis=2)                          # (B, L)

    # softmax over L (last / lane axis); lane-dense (B, L) store.
    out_ref[...] = _softmax_lastdim(e).astype(out_ref.dtype)


class AttnPallas:
    """JAX/Pallas port of the PyTorch Attn module (forward pass)."""

    def __init__(self, method, hidden_size, key):
        if method not in ("dot", "general", "concat"):
            raise ValueError(method, "is not an appropriate attention method.")
        self.method = method
        self.hidden_size = hidden_size

        if method == "general":
            k1, k2 = jax.random.split(key)
            bound = 1.0 / np.sqrt(hidden_size)
            # torch nn.Linear weight layout: (out_features, in_features)
            self.w = jax.random.uniform(
                k1, (hidden_size, hidden_size), jnp.float32, -bound, bound)
            self.b = jax.random.uniform(
                k2, (1, hidden_size), jnp.float32, -bound, bound)
        elif method == "concat":
            k1, k2, k3 = jax.random.split(key, 3)
            bound = 1.0 / np.sqrt(2 * hidden_size)
            self.w = jax.random.uniform(
                k1, (hidden_size, 2 * hidden_size), jnp.float32, -bound, bound)
            self.b = jax.random.uniform(
                k2, (1, hidden_size), jnp.float32, -bound, bound)
            # nn.Parameter(torch.FloatTensor(hiddenSize)) is uninitialized in torch;
            # use a deterministic normal init here.
            self.v = jax.random.normal(k3, (1, hidden_size), jnp.float32)
            # Host-side split + pre-transpose of the concat weight (free layout
            # plumbing; avoids in-kernel w.T / relayout).
            self.w_h_t = jnp.asarray(self.w[:, :hidden_size].T)   # (H, H)
            self.w_e_t = jnp.asarray(self.w[:, hidden_size:].T)   # (H, H)

    def __call__(self, hidden, encoder_output):
        # hidden: (1, B, H), encoder_output: (L, B, H)
        L, B, H = encoder_output.shape
        h2 = hidden[0]                                         # (B, H)
        # batch-major, H on the lane axis; wrapper-side transpose is layout plumbing.
        enc_b = jnp.transpose(encoder_output, (1, 0, 2))       # (B, L, H)

        args = [h2, enc_b]
        if self.method == "general":
            args += [self.w, self.b]
        elif self.method == "concat":
            args += [self.w_h_t, self.w_e_t, self.b, self.v]

        vmem = pl.BlockSpec(memory_space=pltpu.MemorySpace.VMEM)
        # Single full-size VMEM block (shapes are tiny).  For large L, tile over
        # L-chunks with an output-resident (B, L) energy row / online softmax and a
        # "parallel" batch axis for megacore; not needed at these demo sizes.
        energies = pl.pallas_call(
            functools.partial(_attn_kernel, self.method),
            out_shape=jax.ShapeDtypeStruct((B, L), jnp.float32),
            in_specs=[vmem] * len(args),
            out_specs=vmem,
        )(*args)
        # F.softmax(...).unsqueeze(1): (B, L) -> (B, 1, L) done as a wrapper reshape
        # so the kernel store stays lane-dense.
        return energies[:, None, :]


def _attn_ref(module, hidden, encoder_output):
    """Pure-JAX reference mirroring the PyTorch forward exactly (f32 matmuls)."""
    h = hidden[0]                                   # (B, H)
    enc = encoder_output                            # (L, B, H)
    if module.method == "dot":
        e = jnp.sum(h[None] * enc, axis=2)
    elif module.method == "general":
        proj = jnp.einsum("lbi,oi->lbo", enc, module.w, precision=_HIGHEST) + module.b[0]
        e = jnp.sum(h[None] * proj, axis=2)
    else:
        h_exp = jnp.broadcast_to(h[None], enc.shape)
        cat = jnp.concatenate([h_exp, enc], axis=2)
        proj = jnp.tanh(
            jnp.einsum("lbi,oi->lbo", cat, module.w, precision=_HIGHEST) + module.b[0])
        e = jnp.sum(module.v[0] * proj, axis=2)
    et = e.T
    return jax.nn.softmax(et, axis=1)[:, None, :]


if __name__ == "__main__":
    B, L, H = 2, 8, 32
    key = jax.random.PRNGKey(0)
    k_h, k_e, k_p = jax.random.split(key, 3)

    hidden = jax.random.normal(k_h, (1, B, H), jnp.float32)          # (1, B, H)
    encoder_output = jax.random.normal(k_e, (L, B, H), jnp.float32)  # (L, B, H)

    for method in ["dot", "general", "concat"]:
        attn = AttnPallas(method, H, k_p)
        out = jax.block_until_ready(attn(hidden, encoder_output))
        ref = _attn_ref(attn, hidden, encoder_output)
        assert out.shape == (B, 1, L), (method, out.shape)
        np.testing.assert_allclose(np.asarray(out), np.asarray(ref),
                                   rtol=1e-4, atol=1e-5)
        # softmax rows sum to 1
        np.testing.assert_allclose(np.asarray(out).sum(-1), 1.0,
                                   rtol=1e-5, atol=1e-5)

    print("KERNEL_OK")
</pallas_src>

<mosaic_0001>
module attributes {stable_mosaic.version = 11 : i64} {
  func.func @_attn_kernel(%arg0: memref<2x32xf32, #tpu.memory_space<vmem>>, %arg1: memref<2x8x32xf32, #tpu.memory_space<vmem>>, %arg2: memref<2x8xf32, #tpu.memory_space<vmem>>) attributes {dimension_semantics = [], scalar_prefetch = 0 : i64, scratch_operands = 0 : i64, tpu.core_type = #tpu.core_type<tc>} {
    %c0 = arith.constant 0 : index
    %c0_0 = arith.constant 0 : index
    %0 = vector.load %arg0[%c0, %c0_0] : memref<2x32xf32, #tpu.memory_space<vmem>>, vector<2x32xf32>
    %c0_1 = arith.constant 0 : index
    %c0_2 = arith.constant 0 : index
    %c0_3 = arith.constant 0 : index
    %1 = vector.load %arg1[%c0_1, %c0_2, %c0_3] : memref<2x8x32xf32, #tpu.memory_space<vmem>>, vector<2x8x32xf32>
    %2 = vector.shape_cast %0 : vector<2x32xf32> to vector<2x1x32xf32>
    %3 = vector.broadcast %2 : vector<2x1x32xf32> to vector<2x8x32xf32>
    %4 = arith.mulf %1, %3 : vector<2x8x32xf32>
    %cst = arith.constant dense<0.000000e+00> : vector<2x8xf32>
    %5 = vector.multi_reduction <add>, %4, %cst [2] : vector<2x8x32xf32> to vector<2x8xf32>
    %cst_4 = arith.constant dense<0xFF800000> : vector<2xf32>
    %6 = vector.multi_reduction <maximumf>, %5, %cst_4 [1] : vector<2x8xf32> to vector<2xf32>
    %7 = vector.shape_cast %6 : vector<2xf32> to vector<2x1xf32>
    %8 = vector.broadcast %7 : vector<2x1xf32> to vector<2x8xf32>
    %9 = arith.subf %5, %8 : vector<2x8xf32>
    %10 = math.exp %9 : vector<2x8xf32>
    %cst_5 = arith.constant dense<0.000000e+00> : vector<2xf32>
    %11 = vector.multi_reduction <add>, %10, %cst_5 [1] : vector<2x8xf32> to vector<2xf32>
    %12 = vector.shape_cast %11 : vector<2xf32> to vector<2x1xf32>
    %13 = tpu.reciprocal %12 {approx = true} : vector<2x1xf32> -> vector<2x1xf32>
    %14 = arith.mulf %12, %13 : vector<2x1xf32>
    %cst_6 = arith.constant 2.000000e+00 : f32
    %15 = vector.broadcast %cst_6 : f32 to vector<2x1xf32>
    %16 = arith.subf %15, %14 : vector<2x1xf32>
    %17 = arith.mulf %13, %16 : vector<2x1xf32>
    %18 = vector.broadcast %17 : vector<2x1xf32> to vector<2x8xf32>
    %19 = arith.mulf %10, %18 : vector<2x8xf32>
    %c0_7 = arith.constant 0 : index
    %c0_8 = arith.constant 0 : index
    %20 = vector.load %arg2[%c0_7, %c0_8] : memref<2x8xf32, #tpu.memory_space<vmem>>, vector<2x8xf32>
    tpu.vector_store %arg2[%c0_7, %c0_8], %19 {strides = array<i32>} : memref<2x8xf32, #tpu.memory_space<vmem>>, vector<2x8xf32>,
    return
  }
}

</mosaic_0001>

<bundles_post_ra>
// kernel: tpu_custom_call.1
= control target key start
LH: loop header
LB: loop body
LE: loop exit
PB: predicated region body
PF: predicated region fallthrough
CT: control target
= control target key end

     0   :  { %7 = vsyncpa [#allocation3], 0  ;;  %s270_s0 = inlined_call_operand.hbm [shape: f32[2,32], index: 0, kind: input, shape index: {}]   ;;  %s271_s1 = inlined_call_operand.hbm [shape: f32[2,8,32], index: 1, kind: input, shape index: {}]   ;;  %s272_s2 = inlined_call_operand.hbm [shape: f32[2,8], index: 2, kind: output, shape index: {}]  }
   0x1   :  { %8 = vsyncpa [#allocation6], 0 }
   0x2   :  { %9 = vsyncpa [#allocation4], 0  ;;  %s15_s11 = sshll.u32 %s270_s0, 4  ;;  %s234_s12 = smov [#allocation2]   ;;  %s16_s11 = int_to_ptr.hbm [resolvable:$true] %s15_s11 }
   0x3   :  { %s17_s13 = sshll.u32 %s234_s12, 4  ;;  %s25_s16 = sshll.u32 %s271_s1, 4  ;;  %s18_s13 = int_to_ptr.vmem [resolvable:$true] %s17_s13  ;;  %s26_s16 = int_to_ptr.hbm [resolvable:$true] %s25_s16 }
   0x4   :  { %20 = dma.hbm_to_vmem [thread:$0]  %s16_s11, 32, %s18_s13, [#allocation3]  }
   0x5   :  { %s235_s17 = smov [#allocation5]   ;;  %s236_s19 = smov 128  }
   0x6   :  { %s27_s18 = sshll.u32 %s235_s17, 4  ;;  %s237_s20 = smov 8   ;;  %s28_s18 = int_to_ptr.vmem [resolvable:$true] %s27_s18 }
   0x7   :  { %33 = dma.hbm_to_vmem [thread:$0]  %s26_s16, 256, %s28_s18, [#allocation6], %s236_s19, %s236_s19, %s237_s20  }
   0x8   :  { %228 = dma.done.wait [#allocation3], 32  }
   0x9   :  { %229 = vsyncadd [#allocation3], 4294967264 }
   0xa   :  { %230 = dma.done.wait [#allocation6], 256  }
   0xb   :  { %231 = vsyncadd [#allocation6], 4294967040  ;;  %v42_v0 = vld [vmem:[#allocation2] sm:$0x3]  ;;  %v43_v1 = vld [vmem:[#allocation5] sm:$0xff]  ;;  %vm53_vm0 = vcmask 261120   ;;  %v62_v11 = vlaneseq }
   0xc   :  { %v47_v2 = vperm.slane %v42_v0, 0  ;;  %v46_v3 = vrot.slane %v42_v0, 1  ;;  %v44_v6 = vld [vmem:[#allocation5 + $0x8] sm:$0xff]  ;;  %vm66_vm1 = vcmask 1041409   ;;  %vm69_vm2 = vcmask 58368   ;;  %s239_s0 = smov [#allocation7]  }
   0xd   :  { %v63_v12 = vand.u32 127, %v62_v11  ;;  %v238_v18 = vmov 0   ;;  %s128_s1 = sshll.u32 %s239_s0, 4  ;;  %s130_s23 = sshll.u32 %s272_s2, 4  ;;  %s129_s1 = int_to_ptr.vmem [resolvable:$true] %s128_s1  ;;  %s131_s23 = int_to_ptr.hbm [resolvable:$true] %s130_s23 }
   0xe   :  { %v51_v4 = vmul.f32 %v47_v2, %v43_v1  ;;  %v48_v5 = vperm.slane %v46_v3, 0  ;;  %148 = vset.pattern.permute.xlu2 %v238_v18  ;;  %147 = vset.pattern.permute.xlu1 %v238_v18 }
   0xf   :  { %149 = vset.pattern.permute.xlu0 %v238_v18 }
  0x10   :  { %v54_v7 = vsel %vm53_vm0, %v51_v4, 0.0  ;;  %v52_v8 = vmul.f32 %v48_v5, %v44_v6 }
  0x11   :  { %55 = vadd.xlane.f32.xlu0 %v54_v7 }
  0x12   :  { %v57_v9 = vsel %vm53_vm0, %v52_v8, 0.0 }
  0x19   :  { %58 = vadd.xlane.f32.xlu0 %v57_v9 }
  0x84   :  { %v56_v10 = vpop.xlane.xlu0 %55 }
  0x85   :  { %v64_v14 = vperm.slane %v56_v10, %v63_v12 }
  0x8c   :  { %v59_v13 = vpop.xlane.xlu0 %58 }
  0x8d   :  { %v65_v15 = vperm.slane %v59_v13, %v63_v12 }
  0x8f   :  { %v67_v16 = vsel %vm66_vm1, %v65_v15, %v64_v14 }
  0x90   :  { %v70_v17 = vsel %vm69_vm2, %v67_v16, -inf }
  0x91   :  { %71 = vmax.xlane.f32.xlu1 %v70_v17 }
 0x104   :  { %v72_v19 = vpop.xlane.xlu1 %71 }
 0x105   :  { %v74_v20 = vperm.slane %v72_v19, 0  ;;  %v75_v21 = vperm.slane %v72_v19, 1 }
 0x107   :  { %v78_v22 = vsub.f32 %v56_v10, %v74_v20  ;;  %v79_v23 = vsub.f32 %v59_v13, %v75_v21 }
 0x109   :  { %v80_v24 = vmul.f32 1.442695, %v78_v22  ;;  %v82_v25 = vmul.f32 1.442695, %v79_v23 }
 0x10b   :  { %150 = vpow2.f32 %v80_v24 }
 0x10c   :  { %152 = vpow2.f32 %v82_v25 }
 0x111   :  { %v151_v26 = vpop.eup %150 }
 0x112   :  { %v153_v27 = vpop.eup %152  ;;  %87 = vperm.xlu1 %147, %v151_v26  }
 0x113   :  { %90 = vperm.xlu2 %148, %v153_v27  }
 0x16d   :  { %v91_v28 = vpop.permute.xlu2 %90 }
 0x16e   :  { %v93_v30 = vperm.slane %v91_v28, %v63_v12 }
 0x184   :  { %v88_v29 = vpop.permute.xlu1 %87 }
 0x185   :  { %v92_v31 = vperm.slane %v88_v29, %v63_v12 }
 0x187   :  { %v94_v32 = vsel %vm66_vm1, %v93_v30, %v92_v31 }
 0x188   :  { %v96_v33 = vsel %vm69_vm2, %v94_v32, 0.0 }
 0x189   :  { %97 = vadd.xlane.f32.xlu2 %v96_v33 }
 0x1fc   :  { %v98_v34 = vpop.xlane.xlu2 %97 }
 0x1fd   :  { %154 = vrcp.f32 %v98_v34 }
 0x203   :  { %v155_v35 = vpop.eup %154 }
 0x204   :  { %v100_v36 = vmul.f32 %v155_v35, %v98_v34 }
 0x206   :  { %v101_v37 = vsub.f32 2.0, %v100_v36 }
 0x208   :  { %v102_v38 = vmul.f32 %v155_v35, %v101_v37 }
 0x20a   :  { %v104_v39 = vperm.slane %v102_v38, 0  ;;  %v105_v40 = vperm.slane %v102_v38, 1 }
 0x20c   :  { %v109_v41 = vmul.f32 %v153_v27, %v105_v40  ;;  %v108_v42 = vmul.f32 %v151_v26, %v104_v39 }
 0x20e   :  { %116 = vperm.xlu1 %147, %v109_v41   ;;  %113 = vperm.xlu0 %149, %v108_v42  }
 0x280   :  { %v117_v43 = vpop.permute.xlu1 %116  ;;  %v114_v44 = vpop.permute.xlu0 %113 }
 0x281   :  { %v119_v45 = vperm.slane %v117_v43, %v63_v12  ;;  %v118_v46 = vperm.slane %v114_v44, %v63_v12 }
 0x283   :  { %v120_v47 = vsel %vm66_vm1, %v119_v45, %v118_v46 }
 0x284   :  { %122 = vst.msk [vmem:[#allocation7] sm:$0x3] %vm69_vm2, %v120_v47 }
 0x285   :  { %133 = dma.vmem_to_hbm [thread:$0]  %s129_s1, 32, %s131_s23, [#allocation4]  }
 0x286   :  { %232 = dma.done.wait [#allocation4], 32  }
 0x287   :  { %233 = vsyncadd [#allocation4], 4294967264 }
 0x288   :  { %138 = vsyncpa [#allocation3], 1 }
 0x289   :  { %139 = vsyncpa [#allocation6], 1 }
 0x28a   :  { %140 = vsyncpa [#allocation4], 1 }

</bundles_post_ra>
